<compile_context>
chip_gen: v7x
topology: tpu7x:2x2x1
jax: 0.10.0
libtpu: 0.0.40
codegen_flags: <defaults>
</compile_context>

<pallas_src>
import math
import functools

import jax
import jax.numpy as jnp
from jax import lax
from jax.experimental import pallas as pl
from jax.experimental.pallas import tpu as pltpu


# Above the 16/32 MiB scoped defaults, below v7x's 64 MiB physical VMEM.
_VMEM_LIMIT_BYTES = 48 * 1024 * 1024


def _pick_tile(dim, target, align):
    """Largest tile <= target that divides `dim` and respects `align`;
    falls back to the full dim (always a legal block size)."""
    if dim <= target:
        return dim
    t = (target // align) * align
    while t >= align:
        if dim % t == 0:
            return t
        t -= align
    return dim


# ---------------------------------------------------------------------------
# Tiled linear (x @ w + b) with K-accumulation
# ---------------------------------------------------------------------------
def _linear_kernel(x_ref, w_ref, b_ref, o_ref, acc_ref):
    # x: (tm, tk), w: (tk, tn), b: (1, tn), o: (tm, tn), acc: (tm, tn) f32
    k = pl.program_id(2)

    @pl.when(k == 0)
    def _():
        acc_ref[...] = jnp.zeros_like(acc_ref)

    acc_ref[...] += jnp.dot(
        x_ref[...], w_ref[...], preferred_element_type=jnp.float32
    )

    @pl.when(k == pl.num_programs(2) - 1)
    def _():
        o_ref[...] = (acc_ref[...] + b_ref[...].astype(jnp.float32)).astype(
            o_ref.dtype
        )


def pallas_linear(x2d, w, b, *, tm_target=256, tn_target=256, tk_target=512):
    """x2d: (M, K), w: (K, N), b: (N,) -> (M, N)."""
    M, K = x2d.shape
    K2, N = w.shape
    assert K == K2
    tm = _pick_tile(M, tm_target, 8)     # second-to-last dim of x / out blocks
    tn = _pick_tile(N, tn_target, 128)   # last dim of w / out / b blocks
    tk = _pick_tile(K, tk_target, 128)   # last dim of x block, 2nd-to-last of w
    b2d = b.reshape(1, N)

    itemsize = jnp.dtype(x2d.dtype).itemsize
    cost = pl.CostEstimate(
        flops=2 * M * N * K,
        transcendentals=0,
        bytes_accessed=(M * K + K * N + M * N + N) * itemsize,
    )

    return pl.pallas_call(
        _linear_kernel,
        out_shape=jax.ShapeDtypeStruct((M, N), x2d.dtype),
        grid=(M // tm, N // tn, K // tk),
        in_specs=[
            pl.BlockSpec((tm, tk), lambda i, j, k: (i, k)),
            pl.BlockSpec((tk, tn), lambda i, j, k: (k, j)),
            pl.BlockSpec((1, tn), lambda i, j, k: (0, j)),
        ],
        out_specs=pl.BlockSpec((tm, tn), lambda i, j, k: (i, j)),
        scratch_shapes=[pltpu.VMEM((tm, tn), jnp.float32)],
        compiler_params=pltpu.CompilerParams(
            dimension_semantics=("parallel", "parallel", "arbitrary"),
            vmem_limit_bytes=_VMEM_LIMIT_BYTES,
        ),
        cost_estimate=cost,
    )(x2d, w, b2d)


# ---------------------------------------------------------------------------
# Flash-style causal attention (online softmax, causal tile skip)
# ---------------------------------------------------------------------------
def _flash_attn_kernel(q_ref, k_ref, v_ref, o_ref, m_scr, l_scr, acc_scr,
                       *, sm_scale):
    # blocks: q/o (1, tq, hd), k/v (1, tk, hd); scratch in f32.
    qi = pl.program_id(1)
    ki = pl.program_id(2)
    tq = q_ref.shape[1]
    tk = k_ref.shape[1]
    q_start = qi * tq
    k_start = ki * tk

    @pl.when(ki == 0)
    def _():
        m_scr[...] = jnp.full_like(m_scr, -jnp.inf)
        l_scr[...] = jnp.zeros_like(l_scr)
        acc_scr[...] = jnp.zeros_like(acc_scr)

    # Causal skip: kv tile entirely above the diagonal contributes nothing.
    @pl.when(k_start <= q_start + tq - 1)
    def _():
        # Fold the 1/sqrt(hd) scale into q (tq*hd work, not tq*tk).
        q = q_ref[0].astype(jnp.float32) * sm_scale            # (tq, hd)
        k = k_ref[0].astype(jnp.float32)                       # (tk, hd)
        # s = q @ k^T via dot_general on last dims -> no materialized k.T.
        s = lax.dot_general(
            q, k, (((1,), (1,)), ((), ())),
            preferred_element_type=jnp.float32,
        )                                                       # (tq, tk)

        row = q_start + lax.broadcasted_iota(jnp.int32, (tq, tk), 0)
        col = k_start + lax.broadcasted_iota(jnp.int32, (tq, tk), 1)
        s = jnp.where(col <= row, s, jnp.float32(-1e30))

        m_prev = m_scr[...]
        m_new = jnp.maximum(m_prev, jnp.max(s, axis=-1, keepdims=True))
        alpha = jnp.exp(m_prev - m_new)
        p = jnp.exp(s - m_new)
        l_scr[...] = alpha * l_scr[...] + jnp.sum(p, axis=-1, keepdims=True)
        acc_scr[...] = alpha * acc_scr[...] + jnp.dot(
            p.astype(v_ref.dtype), v_ref[0], preferred_element_type=jnp.float32
        )
        m_scr[...] = m_new

    @pl.when(ki == pl.num_programs(2) - 1)
    def _():
        inv_l = pl.reciprocal(l_scr[...], approx=True)   # EUP slot
        o_ref[0] = (acc_scr[...] * inv_l).astype(o_ref.dtype)


def pallas_causal_attention(q, k, v, *, tq_target=256, tk_target=512):
    """q, k, v: (B*H, T, hd) head-major -> (B*H, T, hd) causal attention."""
    BH, T, hd = q.shape
    tq = _pick_tile(T, tq_target, 8)
    tk = _pick_tile(T, tk_target, 8)
    sm_scale = 1.0 / math.sqrt(hd)

    itemsize = jnp.dtype(q.dtype).itemsize
    cost = pl.CostEstimate(
        flops=4 * BH * T * T * hd,          # QK^T + PV (upper bound, pre-skip)
        transcendentals=BH * T * T,         # exp
        bytes_accessed=4 * BH * T * hd * itemsize,
    )

    qkv_spec_q = pl.BlockSpec((1, tq, hd), lambda bh, qi, ki: (bh, qi, 0))
    qkv_spec_k = pl.BlockSpec((1, tk, hd), lambda bh, qi, ki: (bh, ki, 0))

    return pl.pallas_call(
        functools.partial(_flash_attn_kernel, sm_scale=sm_scale),
        out_shape=jax.ShapeDtypeStruct((BH, T, hd), q.dtype),
        grid=(BH, T // tq, T // tk),
        in_specs=[qkv_spec_q, qkv_spec_k, qkv_spec_k],
        out_specs=pl.BlockSpec((1, tq, hd), lambda bh, qi, ki: (bh, qi, 0)),
        scratch_shapes=[
            pltpu.VMEM((tq, 1), jnp.float32),    # running max m
            pltpu.VMEM((tq, 1), jnp.float32),    # running denom l
            pltpu.VMEM((tq, hd), jnp.float32),   # running output acc
        ],
        compiler_params=pltpu.CompilerParams(
            dimension_semantics=("parallel", "parallel", "arbitrary"),
            vmem_limit_bytes=_VMEM_LIMIT_BYTES,
        ),
        cost_estimate=cost,
    )(q, k, v)


# ---------------------------------------------------------------------------
# Module forward
# ---------------------------------------------------------------------------
def causal_self_attention(x, params, n_head):
    """Forward pass equivalent to CausalSelfAttention.forward(x, None, None)."""
    B, T, C = x.shape
    hd = C // n_head
    w_attn, b_attn, w_proj, b_proj = (
        params["w_attn"], params["b_attn"], params["w_proj"], params["b_proj"]
    )

    # c_attn: (B*T, C) @ (C, 3C) + b  (weights stored nn.Linear-style (out, in))
    qkv = pallas_linear(x.reshape(B * T, C), w_attn.T, b_attn)   # (B*T, 3C)
    qkv = qkv.reshape(B, T, 3 * C)
    q, k, v = jnp.split(qkv, 3, axis=2)                          # each (B, T, C)

    # kv cache output (kv_config is None path)
    current_cache = jnp.concatenate([k, v], axis=1)              # (B, 2T, C)

    # (B, T, C) -> (B*H, T, hd) head-major layout for the attention kernel.
    # TODO(synk): fold this relayout into the c_attn output layout / BlockSpec
    # index_maps and pack heads for lane-dense (>=128) output stores.
    def to_heads(t):
        return (
            t.reshape(B, T, n_head, hd)
             .transpose(0, 2, 1, 3)
             .reshape(B * n_head, T, hd)
        )

    y = pallas_causal_attention(to_heads(q), to_heads(k), to_heads(v))
    y = y.reshape(B, n_head, T, hd).transpose(0, 2, 1, 3).reshape(B, T, C)

    # c_proj
    y = pallas_linear(y.reshape(B * T, C), w_proj.T, b_proj).reshape(B, T, C)
    return y, current_cache


# ---------------------------------------------------------------------------
# Pure-JAX reference (for sanity check)
# ---------------------------------------------------------------------------
def reference(x, params, n_head):
    B, T, C = x.shape
    hd = C // n_head
    qkv = x.reshape(B * T, C) @ params["w_attn"].T + params["b_attn"]
    qkv = qkv.reshape(B, T, 3 * C)
    q, k, v = jnp.split(qkv, 3, axis=2)
    cache = jnp.concatenate([k, v], axis=1)
    q = q.reshape(B, T, n_head, hd).transpose(0, 2, 1, 3)
    k = k.reshape(B, T, n_head, hd).transpose(0, 2, 1, 3)
    v = v.reshape(B, T, n_head, hd).transpose(0, 2, 1, 3)
    s = jnp.einsum("bhqd,bhkd->bhqk", q, k) / math.sqrt(hd)
    mask = jnp.tril(jnp.ones((T, T), dtype=bool))
    s = jnp.where(mask, s, -1e30)
    p = jax.nn.softmax(s, axis=-1)
    y = jnp.einsum("bhqk,bhkd->bhqd", p, v)
    y = y.transpose(0, 2, 1, 3).reshape(B, T, C)
    y = y.reshape(B * T, C) @ params["w_proj"].T + params["b_proj"]
    return y.reshape(B, T, C), cache


# ---------------------------------------------------------------------------
if __name__ == "__main__":
    # small GPT-2-like config
    B, T, C, n_head = 2, 8, 32, 4

    key = jax.random.PRNGKey(0)
    kx, k1, k2, k3, k4 = jax.random.split(key, 5)

    x = jax.random.normal(kx, (B, T, C), dtype=jnp.float32)

    # deterministic parameter init (shapes follow nn.Linear: W is (out, in))
    params = {
        "w_attn": jax.random.normal(k1, (3 * C, C), dtype=jnp.float32) * 0.02,
        "b_attn": jax.random.normal(k2, (3 * C,), dtype=jnp.float32) * 0.02,
        "w_proj": jax.random.normal(k3, (C, C), dtype=jnp.float32) * 0.02,
        "b_proj": jax.random.normal(k4, (C,), dtype=jnp.float32) * 0.02,
    }

    y, cache = causal_self_attention(x, params, n_head)
    y = jax.block_until_ready(y)
    cache = jax.block_until_ready(cache)

    y_ref, cache_ref = reference(x, params, n_head)
    assert y.shape == (B, T, C)
    assert cache.shape == (B, 2 * T, C)
    # approx reciprocal in the flash finalize -> compare at 1e-3
    assert jnp.allclose(y, y_ref, atol=1e-3, rtol=1e-3)
    assert jnp.allclose(cache, cache_ref, atol=1e-3, rtol=1e-3)

    print("KERNEL_OK")
</pallas_src>

<mosaic_0001>
module attributes {stable_mosaic.version = 11 : i64} {
  func.func @_linear_kernel(%arg0: i32, %arg1: i32, %arg2: i32, %arg3: memref<16x32xf32, #tpu.memory_space<vmem>>, %arg4: memref<32x96xf32, #tpu.memory_space<vmem>>, %arg5: memref<1x96xf32, #tpu.memory_space<vmem>>, %arg6: memref<16x96xf32, #tpu.memory_space<vmem>>, %arg7: memref<16x96xf32, #tpu.memory_space<vmem>>) attributes {dimension_semantics = [#tpu.dimension_semantics<parallel>, #tpu.dimension_semantics<parallel>, #tpu.dimension_semantics<arbitrary>], iteration_bounds = array<i64: 1, 1, 1>, scalar_prefetch = 0 : i64, scratch_operands = 1 : i64, tpu.core_type = #tpu.core_type<tc>, window_params = [{transform_indices = @transform_0, window_bounds = array<i64: 16, 32>}, {transform_indices = @transform_1, window_bounds = array<i64: 32, 96>}, {transform_indices = @transform_2, window_bounds = array<i64: 1, 96>}, {transform_indices = @transform_3, window_bounds = array<i64: 16, 96>}]} {
    %c0_i32 = arith.constant 0 : i32
    %0 = arith.cmpi eq, %arg2, %c0_i32 : i32
    %1 = arith.extui %0 : i1 to i32
    %c0_i32_0 = arith.constant 0 : i32
    %2 = arith.cmpi ne, %1, %c0_i32_0 : i32
    scf.if %2 {
      %cst_10 = arith.constant 0.000000e+00 : f32
      %12 = vector.broadcast %cst_10 : f32 to vector<16x96xf32>
      %c0_11 = arith.constant 0 : index
      %c0_12 = arith.constant 0 : index
      %13 = vector.load %arg7[%c0_11, %c0_12] : memref<16x96xf32, #tpu.memory_space<vmem>>, vector<16x96xf32>
      tpu.vector_store %arg7[%c0_11, %c0_12], %12 {strides = array<i32>} : memref<16x96xf32, #tpu.memory_space<vmem>>, vector<16x96xf32>,
    } else {
    }
    %c0 = arith.constant 0 : index
    %c0_1 = arith.constant 0 : index
    %3 = vector.load %arg7[%c0, %c0_1] : memref<16x96xf32, #tpu.memory_space<vmem>>, vector<16x96xf32>
    %c0_2 = arith.constant 0 : index
    %c0_3 = arith.constant 0 : index
    %4 = vector.load %arg3[%c0_2, %c0_3] : memref<16x32xf32, #tpu.memory_space<vmem>>, vector<16x32xf32>
    %c0_4 = arith.constant 0 : index
    %c0_5 = arith.constant 0 : index
    %5 = vector.load %arg4[%c0_4, %c0_5] : memref<32x96xf32, #tpu.memory_space<vmem>>, vector<32x96xf32>
    %cst = arith.constant dense<0.000000e+00> : vector<16x96xf32>
    %6 = tpu.matmul %4, %5, %cst {dimension_numbers = #tpu.dot_dimension_numbers<[1], [0], [0], [1], [0, 0, 1, 1], [], []>} : vector<16x32xf32>, vector<32x96xf32>, vector<16x96xf32> -> vector<16x96xf32>
    %7 = arith.addf %3, %6 : vector<16x96xf32>
    %c0_6 = arith.constant 0 : index
    %c0_7 = arith.constant 0 : index
    %8 = vector.load %arg7[%c0_6, %c0_7] : memref<16x96xf32, #tpu.memory_space<vmem>>, vector<16x96xf32>
    tpu.vector_store %arg7[%c0_6, %c0_7], %7 {strides = array<i32>} : memref<16x96xf32, #tpu.memory_space<vmem>>, vector<16x96xf32>,
    %c0_i32_8 = arith.constant 0 : i32
    %9 = arith.cmpi eq, %arg2, %c0_i32_8 : i32
    %10 = arith.extui %9 : i1 to i32
    %c0_i32_9 = arith.constant 0 : i32
    %11 = arith.cmpi ne, %10, %c0_i32_9 : i32
    scf.if %11 {
      %c0_10 = arith.constant 0 : index
      %c0_11 = arith.constant 0 : index
      %12 = vector.load %arg7[%c0_10, %c0_11] : memref<16x96xf32, #tpu.memory_space<vmem>>, vector<16x96xf32>
      %c0_12 = arith.constant 0 : index
      %c0_13 = arith.constant 0 : index
      %13 = vector.load %arg5[%c0_12, %c0_13] : memref<1x96xf32, #tpu.memory_space<vmem>>, vector<1x96xf32>
      %14 = vector.broadcast %13 : vector<1x96xf32> to vector<16x96xf32>
      %15 = arith.addf %12, %14 : vector<16x96xf32>
      %c0_14 = arith.constant 0 : index
      %c0_15 = arith.constant 0 : index
      %16 = vector.load %arg6[%c0_14, %c0_15] : memref<16x96xf32, #tpu.memory_space<vmem>>, vector<16x96xf32>
      tpu.vector_store %arg6[%c0_14, %c0_15], %15 {strides = array<i32>} : memref<16x96xf32, #tpu.memory_space<vmem>>, vector<16x96xf32>,
    } else {
    }
    return
  }
  func.func @transform_0(%arg0: i32, %arg1: i32, %arg2: i32) -> (i32, i32) {
    %c0_i32 = arith.constant 0 : i32
    return %arg0, %arg2 : i32, i32
  }
  func.func @transform_1(%arg0: i32, %arg1: i32, %arg2: i32) -> (i32, i32) {
    %c0_i32 = arith.constant 0 : i32
    return %arg2, %arg1 : i32, i32
  }
  func.func @transform_2(%arg0: i32, %arg1: i32, %arg2: i32) -> (i32, i32) {
    %c0_i32 = arith.constant 0 : i32
    %c0_i32_0 = arith.constant 0 : i32
    return %c0_i32, %arg1 : i32, i32
  }
  func.func @transform_3(%arg0: i32, %arg1: i32, %arg2: i32) -> (i32, i32) {
    %c0_i32 = arith.constant 0 : i32
    return %arg0, %arg1 : i32, i32
  }
}

</mosaic_0001>

<bundles_post_ra>
// kernel: tpu_custom_call.1
= control target key start
LH: loop header
LB: loop body
LE: loop exit
PB: predicated region body
PF: predicated region fallthrough
CT: control target
= control target key end

     0   :  { %8 = vsyncpa [#allocation4], 0  ;;  %s365_s0 = inlined_call_operand.hbm [shape: f32[16,32], index: 0, kind: input, shape index: {}]   ;;  %s366_s1 = inlined_call_operand.hbm [shape: f32[32,96], index: 1, kind: input, shape index: {}]   ;;  %s367_s2 = inlined_call_operand.vmem [shape: f32[1,96], index: 2, kind: input, shape index: {}]   ;;  %s368_s3 = inlined_call_operand.hbm [shape: f32[16,96], index: 3, kind: output, shape index: {}]  }
   0x1   :  { %9 = vsyncpa [#allocation7], 0 }
   0x2   :  { %10 = vsyncpa [#allocation5], 0  ;;  %s285_s12 = smov [#allocation3]   ;;  %s213_s16 = scalar_lea.hbm %s365_s0, 256 }
   0x3   :  { %s16_s13 = sshll.u32 %s285_s12, 4  ;;  %p214_p0 = scmp.ne.s32.totalorder %s365_s0, %s213_s16  ;;  %s17_s13 = int_to_ptr.vmem [resolvable:$true] %s16_s13 }
   0x4   :  { %p217_p1 = scmp.lt.u32.totalorder %s213_s16, %s365_s0 }
   0x6   :  { %p219_p2 = pnand %p217_p1, %p214_p0 }
   0x8   :  { %222 = shalt.err (!%p219_p2)
}
   0x9   :  { %s223_s21 = scalar_lea.vmem %s17_s13, 256  ;;  %p228_p4 = scmp.lt.s32.totalorder %s17_s13, %s17_s13 }
   0xa   :  { %p224_p3 = scmp.ne.s32.totalorder %s17_s13, %s223_s21  ;;  %p229_p5 = scmp.lt.s32.totalorder %s223_s21, %s223_s21 }
   0xc   :  { %p230_p6 = por %p229_p5, %p228_p4 }
   0xe   :  { %p231_p7 = pnand %p230_p6, %p224_p3 }
  0x10   :  { %234 = shalt.err (!%p231_p7)
}
  0x11   :  { %s286_s22 = smov 128   ;;  %s287_s23 = smov 8  }
  0x12   :  { %22 = dma.hbm_to_vmem [thread:$0]  %s365_s0, 256, %s17_s13, [#allocation4], %s286_s22, %s286_s22, %s287_s23  }
  0x13   :  { %s288_s26 = smov [#allocation6]   ;;  %s235_s30 = scalar_lea.hbm %s366_s1, 512 }
  0x14   :  { %s28_s27 = sshll.u32 %s288_s26, 4  ;;  %p236_p8 = scmp.ne.s32.totalorder %s366_s1, %s235_s30  ;;  %s29_s27 = int_to_ptr.vmem [resolvable:$true] %s28_s27 }
  0x15   :  { %p239_p9 = scmp.lt.u32.totalorder %s235_s30, %s366_s1 }
  0x17   :  { %p241_p10 = pnand %p239_p9, %p236_p8 }
  0x19   :  { %244 = shalt.err (!%p241_p10)
}
  0x1a   :  { %s245_s8 = scalar_lea.vmem %s29_s27, 512  ;;  %p250_p12 = scmp.lt.s32.totalorder %s29_s27, %s29_s27 }
  0x1b   :  { %p246_p11 = scmp.ne.s32.totalorder %s29_s27, %s245_s8  ;;  %p251_p13 = scmp.lt.s32.totalorder %s245_s8, %s245_s8 }
  0x1d   :  { %p252_p0 = por %p251_p13, %p250_p12 }
  0x1f   :  { %p253_p1 = pnand %p252_p0, %p246_p11 }
  0x21   :  { %256 = shalt.err (!%p253_p1)
}
  0x22   :  { %34 = dma.hbm_to_vmem [thread:$0]  %s366_s1, 512, %s29_s27, [#allocation7], %s286_s22, %s286_s22, %s287_s23  }
  0x23   :  { %279 = dma.done.wait [#allocation4], 256  }
  0x24   :  { %280 = vsyncadd [#allocation4], 4294967040 }
  0x25   :  { %281 = dma.done.wait [#allocation7], 512  }
  0x26   :  { %282 = vsyncadd [#allocation7], 4294966784  ;;  %vm47_vm0 = vcmask 785408   ;;  %v289_v0 = vmov 0.0   ;;  %vm58_vm1 = vcmask 261120   ;;  %v54_v1 = vld [vmem:[#allocation6] sm:$0xff] }
  0x27   :  { %49 = vst.msk [vmem:[#allocation2 + $0x8] sm:$0xff] %vm47_vm0, %v289_v0  ;;  %48 = vst.msk [vmem:[#allocation2] sm:$0xff] %vm47_vm0, %v289_v0  ;;  %v55_v2 = vld [vmem:[#allocation6 + $0x8] sm:$0xff]  ;;  %v56_v3 = vld [vmem:[#allocation6 + $0x10] sm:$0xff]  ;;  %s290_s11 = smov [#allocation8]  }
  0x28   :  { %v199_v4 = vpack.c.bf16 %v55_v2, %v54_v1  ;;  %v57_v5 = vld [vmem:[#allocation6 + $0x18] sm:$0xff]  ;;  %v52_v6 = vld [vmem:[#allocation3] sm:$0xff]  ;;  %v181_v15 = vld [vmem:[%s367_s2] ss:$0 sm:$0xff]  ;;  %s166_s12 = sshll.u32 %s290_s11, 4  ;;  %s167_s12 = int_to_ptr.vmem [resolvable:$true] %s166_s12 }
  0x29   :  { %v203_v7 = vpack.c.bf16 %v57_v5, %v56_v3  ;;  %196 = vmatprep.mubr.msk.f32.mxu0 %vm58_vm1, %v52_v6  ;;  %v53_v8 = vld [vmem:[#allocation3 + $0x8] sm:$0xff]  ;;  %s257_s13 = scalar_lea.vmem %s167_s12, 256  ;;  %p262_p3 = scmp.lt.s32.totalorder %s167_s12, %s167_s12 }
  0x2a   :  { %200 = vmatprep.subr.bf16.mxu0 %v199_v4  ;;  %p258_p2 = scmp.ne.s32.totalorder %s167_s12, %s257_s13  ;;  %p263_p4 = scmp.lt.s32.totalorder %s257_s13, %s257_s13 }
  0x2b   :  { %202 = vmatpush3.bf16.msra.mxu0 %v199_v4 }
  0x2c   :  { %204 = vmatprep.subr.bf16.mxu0 %v203_v7  ;;  %p264_p5 = por %p263_p4, %p262_p3 }
  0x2e   :  { %v51_v9 = vld [vmem:[#allocation2 + $0x8] sm:$0xff]  ;;  %v50_v10 = vld [vmem:[#allocation2] sm:$0xff]  ;;  %p265_p6 = pnand %p264_p5, %p258_p2 }
  0x2f   :  { %206 = vmatpush3.bf16.msra.mxu0 %v203_v7 }
  0x32   :  { %197 = vmatmul.mubr.msk.f32.vlgmr.msra.gmra.mrb[0].mxu0 %vm58_vm1, %v53_v8 }
 0x105   :  { %v198_v11 = vpop.f32.mrb[0].mxu0 }
 0x106   :  { %v141_v12 = vadd.f32 %v198_v11, %v51_v9  ;;  %v131_v13 = vpop.f32.mrb[1].mxu0 }
 0x107   :  { %v140_v14 = vadd.f32 %v131_v13, %v50_v10 }
 0x108   :  { %144 = vst.msk [vmem:[#allocation2 + $0x8] sm:$0xff] %vm47_vm0, %v141_v12 }
 0x109   :  { %143 = vst.msk [vmem:[#allocation2] sm:$0xff] %vm47_vm0, %v140_v14 }
 0x10f   :  { %v149_v16 = vld [vmem:[#allocation2 + $0x8] sm:$0xff] }
 0x110   :  { %v148_v17 = vld [vmem:[#allocation2] sm:$0xff]  ;;  %v158_v18 = vadd.f32 %v181_v15, %v149_v16 }
 0x111   :  { %v157_v19 = vadd.f32 %v181_v15, %v148_v17 }
 0x112   :  { %160 = vst.msk [vmem:[#allocation8 + $0x8] sm:$0xff] %vm47_vm0, %v158_v18 }
 0x113   :  { %159 = vst.msk [vmem:[#allocation8] sm:$0xff] %vm47_vm0, %v157_v19 }
 0x114   :  { %268 = shalt.err (!%p265_p6)
}
 0x115   :  { %s269_s15 = scalar_lea.hbm %s368_s3, 256 }
 0x116   :  { %p270_p7 = scmp.ne.s32.totalorder %s368_s3, %s269_s15  ;;  %p273_p8 = scmp.lt.u32.totalorder %s269_s15, %s368_s3 }
 0x118   :  { %p275_p9 = pnand %p273_p8, %p270_p7 }
 0x11a   :  { %278 = shalt.err (!%p275_p9)
}
 0x11b   :  { %172 = dma.vmem_to_hbm [thread:$0]  %s167_s12, 256, %s368_s3, [#allocation5], %s286_s22, %s286_s22, %s287_s23  }
 0x11c   :  { %283 = dma.done.wait [#allocation5], 256  }
 0x11d   :  { %284 = vsyncadd [#allocation5], 4294967040 }
 0x11e   :  { %176 = vsyncpa [#allocation4], 1 }
 0x11f   :  { %177 = vsyncpa [#allocation7], 1 }
 0x120   :  { %178 = vsyncpa [#allocation5], 1 }

</bundles_post_ra>
